<compile_context>
chip_gen: v7x
topology: tpu7x:2x2x1
jax: 0.10.0
libtpu: 0.0.40
codegen_flags: <defaults>
</compile_context>

<pallas_src>
import jax
import jax.numpy as jnp
import numpy as np
from jax.experimental import pallas as pl
from jax.experimental.pallas import tpu as pltpu


def _round_up(n, m):
    return ((n + m - 1) // m) * m


def _make_kernel(h_dim, h_chunk, o_dim):
    """Kernel: one row-tile of x -> fused fc1/ReLU/fc2 over H chunks."""
    n_chunks = h_dim // h_chunk

    def kernel(x_ref, w1t_ref, b1_ref, w2_ref, b2_ref, o_ref):
        x = x_ref[...]                                      # (tm, d_in) bf16
        acc = jnp.zeros((x_ref.shape[0], o_dim), jnp.float32)
        for c in range(n_chunks):                           # static, tiny trip count
            lo = c * h_chunk
            hi = lo + h_chunk
            # fc1 chunk on the MXU: bf16 operands, f32 accumulation.
            hc = jnp.dot(x, w1t_ref[:, lo:hi],
                         preferred_element_type=jnp.float32)
            # bias + ReLU in f32 (VPU).
            hc = jnp.maximum(hc + b1_ref[:, lo:hi], 0.0)
            if o_dim == 1:
                # fc2 contribution on VPU/XLU: broadcast-mul + cross-lane reduce.
                acc = acc + jnp.sum(hc * w2_ref[:, lo:hi], axis=-1, keepdims=True)
            else:
                acc = acc + jnp.dot(hc.astype(w2_ref.dtype), w2_ref[lo:hi, :],
                                    preferred_element_type=jnp.float32)
        if o_dim == 1:
            acc = acc + b2_ref[0]                           # scalar from SMEM
        else:
            acc = acc + b2_ref[...]
        o_ref[...] = acc.astype(o_ref.dtype)

    return kernel


def decoder_forward(x, fc1_w, fc1_b, fc2_w, fc2_b, *, tile_m=256):
    """relu(x @ fc1_w.T + fc1_b) @ fc2_w.T + fc2_b for x of shape (..., input_dim).

    Weights follow the PyTorch convention: fc*_w is (out_features, in_features).
    """
    orig_lead = x.shape[:-1]
    d_in = x.shape[-1]
    h_dim = fc1_w.shape[0]
    o_dim = fc2_w.shape[0]
    n = int(np.prod(orig_lead)) if orig_lead else 1

    # --- host-side layout plumbing (done once) ---
    # bf16 for MXU operands only; biases / fc2 row stay f32.
    x2 = x.reshape(n, d_in).astype(jnp.bfloat16)
    w1t = jnp.asarray(fc1_w).T.astype(jnp.bfloat16)          # (d_in, H)
    b1 = jnp.asarray(fc1_b, jnp.float32).reshape(1, h_dim)

    if o_dim == 1:
        w2 = jnp.asarray(fc2_w, jnp.float32).reshape(1, h_dim)   # VPU row
        b2 = jnp.asarray(fc2_b, jnp.float32).reshape(1)          # SMEM scalar
        w2_spec = pl.BlockSpec((1, h_dim), lambda i: (0, 0))
        b2_spec = pl.BlockSpec(memory_space=pltpu.MemorySpace.SMEM)
    else:
        w2 = jnp.asarray(fc2_w).T.astype(jnp.bfloat16)            # (H, O) MXU
        b2 = jnp.asarray(fc2_b, jnp.float32).reshape(1, o_dim)
        w2_spec = pl.BlockSpec((h_dim, o_dim), lambda i: (0, 0))
        b2_spec = pl.BlockSpec((1, o_dim), lambda i: (0, 0))

    # --- row tiling: pad only to a multiple of 8, tile must divide n_pad ---
    n_pad = _round_up(n, 8)
    if n_pad != n:
        x2 = jnp.pad(x2, ((0, n_pad - n), (0, 0)))

    tm_cap = min(tile_m, n_pad)
    if n_pad >= 16:
        # aim for >=2 grid iterations so v7x can shard the row axis across both TCs
        tm_cap = min(tm_cap, max(8, n_pad // 2))
    tm_cap = max(8, (tm_cap // 8) * 8)
    tm = 8
    for cand in range(tm_cap, 7, -8):
        if n_pad % cand == 0:
            tm = cand
            break
    grid = (n_pad // tm,)

    # --- H chunking for the fused fc1->ReLU->fc2 loop ---
    if h_dim % 256 == 0:
        h_chunk = 256
    elif h_dim % 128 == 0:
        h_chunk = 128
    else:
        h_chunk = h_dim

    out = pl.pallas_call(
        _make_kernel(h_dim, h_chunk, o_dim),
        out_shape=jax.ShapeDtypeStruct((n_pad, o_dim), jnp.float32),
        grid=grid,
        in_specs=[
            pl.BlockSpec((tm, d_in), lambda i: (i, 0)),      # x row tile
            pl.BlockSpec((d_in, h_dim), lambda i: (0, 0)),   # fc1.weight^T (resident)
            pl.BlockSpec((1, h_dim), lambda i: (0, 0)),      # fc1.bias (f32)
            w2_spec,                                         # fc2 weight (row / resident)
            b2_spec,                                         # fc2 bias (SMEM scalar)
        ],
        out_specs=pl.BlockSpec((tm, o_dim), lambda i: (i, 0)),
        compiler_params=pltpu.CompilerParams(
            dimension_semantics=("parallel",)),              # megacore on v7x
    )(x2, w1t, b1, w2, b2)

    return out[:n].reshape(*orig_lead, o_dim)


if __name__ == "__main__":
    # Module defaults: hidden_dimension=512, out_dimension=1; small input/batch.
    input_dim, hidden_dim, out_dim = 16, 512, 1
    batch, seq = 2, 8                                  # x: (2, 8, 16)

    key = jax.random.PRNGKey(0)
    kx, k1, k2, k3, k4 = jax.random.split(key, 5)
    x = jax.random.normal(kx, (batch, seq, input_dim), jnp.float32)

    # PyTorch-style U(-1/sqrt(fan_in), 1/sqrt(fan_in)) init.
    lim1 = 1.0 / np.sqrt(input_dim)
    lim2 = 1.0 / np.sqrt(hidden_dim)
    fc1_w = jax.random.uniform(k1, (hidden_dim, input_dim), jnp.float32, -lim1, lim1)
    fc1_b = jax.random.uniform(k2, (hidden_dim,), jnp.float32, -lim1, lim1)
    fc2_w = jax.random.uniform(k3, (out_dim, hidden_dim), jnp.float32, -lim2, lim2)
    fc2_b = jax.random.uniform(k4, (out_dim,), jnp.float32, -lim2, lim2)

    out = decoder_forward(x, fc1_w, fc1_b, fc2_w, fc2_b)
    out = jax.block_until_ready(out)

    # Pure-JAX f32 reference (exact math; kernel uses bf16 MXU operands,
    # so tolerance is loosened accordingly).
    ref = jnp.maximum(jnp.dot(x.reshape(-1, input_dim), fc1_w.T) + fc1_b, 0.0)
    ref = (jnp.dot(ref, fc2_w.T) + fc2_b).reshape(batch, seq, out_dim)

    assert out.shape == (batch, seq, out_dim)
    assert np.allclose(np.asarray(out), np.asarray(ref), atol=3e-2, rtol=3e-2), (
        float(np.max(np.abs(np.asarray(out) - np.asarray(ref)))))
    print("KERNEL_OK")
</pallas_src>

<mosaic_0001>
module attributes {stable_mosaic.version = 11 : i64} {
  func.func @kernel(%arg0: i32, %arg1: memref<8x16xbf16, #tpu.memory_space<vmem>>, %arg2: memref<16x512xbf16, #tpu.memory_space<vmem>>, %arg3: memref<1x512xf32, #tpu.memory_space<vmem>>, %arg4: memref<1x512xf32, #tpu.memory_space<vmem>>, %arg5: memref<1xf32, #tpu.memory_space<smem>>, %arg6: memref<8x1xf32, #tpu.memory_space<vmem>>) attributes {dimension_semantics = [#tpu.dimension_semantics<parallel>], iteration_bounds = array<i64: 2>, scalar_prefetch = 0 : i64, scratch_operands = 0 : i64, tpu.core_type = #tpu.core_type<tc>, window_params = [{transform_indices = @transform_0, window_bounds = array<i64: 8, 16>}, {pipeline_mode = #tpu.pipeline_mode<synchronous>, transform_indices = @transform_1, window_bounds = array<i64: 16, 512>}, {pipeline_mode = #tpu.pipeline_mode<synchronous>, transform_indices = @transform_2, window_bounds = array<i64: 1, 512>}, {pipeline_mode = #tpu.pipeline_mode<synchronous>, transform_indices = @transform_3, window_bounds = array<i64: 1, 512>}, {transform_indices = @transform_4, window_bounds = array<i64: 1>}, {transform_indices = @transform_5, window_bounds = array<i64: 8, 1>}]} {
    %c0 = arith.constant 0 : index
    %c0_0 = arith.constant 0 : index
    %0 = vector.load %arg1[%c0, %c0_0] : memref<8x16xbf16, #tpu.memory_space<vmem>>, vector<8x16xbf16>
    %cst = arith.constant 0.000000e+00 : f32
    %1 = vector.broadcast %cst : f32 to vector<8x1xf32>
    %c0_1 = arith.constant 0 : index
    %c0_2 = arith.constant 0 : index
    %2 = vector.load %arg2[%c0_1, %c0_2] : memref<16x512xbf16, #tpu.memory_space<vmem>>, vector<16x256xbf16>
    %cst_3 = arith.constant dense<0.000000e+00> : vector<8x256xf32>
    %3 = tpu.matmul %0, %2, %cst_3 {dimension_numbers = #tpu.dot_dimension_numbers<[1], [0], [0], [1], [0, 0, 1, 1], [], []>} : vector<8x16xbf16>, vector<16x256xbf16>, vector<8x256xf32> -> vector<8x256xf32>
    %c0_4 = arith.constant 0 : index
    %c0_5 = arith.constant 0 : index
    %4 = vector.load %arg3[%c0_4, %c0_5] : memref<1x512xf32, #tpu.memory_space<vmem>>, vector<1x256xf32>
    %5 = vector.broadcast %4 : vector<1x256xf32> to vector<8x256xf32>
    %6 = arith.addf %3, %5 : vector<8x256xf32>
    %cst_6 = arith.constant 0.000000e+00 : f32
    %7 = vector.broadcast %cst_6 : f32 to vector<8x256xf32>
    %8 = arith.maximumf %6, %7 : vector<8x256xf32>
    %c0_7 = arith.constant 0 : index
    %c0_8 = arith.constant 0 : index
    %9 = vector.load %arg4[%c0_7, %c0_8] : memref<1x512xf32, #tpu.memory_space<vmem>>, vector<1x256xf32>
    %10 = vector.broadcast %9 : vector<1x256xf32> to vector<8x256xf32>
    %11 = arith.mulf %8, %10 : vector<8x256xf32>
    %cst_9 = arith.constant dense<0.000000e+00> : vector<8xf32>
    %12 = vector.multi_reduction <add>, %11, %cst_9 [1] : vector<8x256xf32> to vector<8xf32>
    %13 = vector.shape_cast %12 : vector<8xf32> to vector<8x1xf32>
    %14 = arith.addf %1, %13 : vector<8x1xf32>
    %c0_10 = arith.constant 0 : index
    %c256 = arith.constant 256 : index
    %15 = vector.load %arg2[%c0_10, %c256] : memref<16x512xbf16, #tpu.memory_space<vmem>>, vector<16x256xbf16>
    %cst_11 = arith.constant dense<0.000000e+00> : vector<8x256xf32>
    %16 = tpu.matmul %0, %15, %cst_11 {dimension_numbers = #tpu.dot_dimension_numbers<[1], [0], [0], [1], [0, 0, 1, 1], [], []>} : vector<8x16xbf16>, vector<16x256xbf16>, vector<8x256xf32> -> vector<8x256xf32>
    %c0_12 = arith.constant 0 : index
    %c256_13 = arith.constant 256 : index
    %17 = vector.load %arg3[%c0_12, %c256_13] : memref<1x512xf32, #tpu.memory_space<vmem>>, vector<1x256xf32>
    %18 = vector.broadcast %17 : vector<1x256xf32> to vector<8x256xf32>
    %19 = arith.addf %16, %18 : vector<8x256xf32>
    %cst_14 = arith.constant 0.000000e+00 : f32
    %20 = vector.broadcast %cst_14 : f32 to vector<8x256xf32>
    %21 = arith.maximumf %19, %20 : vector<8x256xf32>
    %c0_15 = arith.constant 0 : index
    %c256_16 = arith.constant 256 : index
    %22 = vector.load %arg4[%c0_15, %c256_16] : memref<1x512xf32, #tpu.memory_space<vmem>>, vector<1x256xf32>
    %23 = vector.broadcast %22 : vector<1x256xf32> to vector<8x256xf32>
    %24 = arith.mulf %21, %23 : vector<8x256xf32>
    %cst_17 = arith.constant dense<0.000000e+00> : vector<8xf32>
    %25 = vector.multi_reduction <add>, %24, %cst_17 [1] : vector<8x256xf32> to vector<8xf32>
    %26 = vector.shape_cast %25 : vector<8xf32> to vector<8x1xf32>
    %27 = arith.addf %14, %26 : vector<8x1xf32>
    %c0_18 = arith.constant 0 : index
    %28 = memref.load %arg5[%c0_18] : memref<1xf32, #tpu.memory_space<smem>>
    %29 = vector.broadcast %28 : f32 to vector<8x1xf32>
    %30 = arith.addf %27, %29 : vector<8x1xf32>
    %c0_19 = arith.constant 0 : index
    %c0_20 = arith.constant 0 : index
    %31 = vector.load %arg6[%c0_19, %c0_20] : memref<8x1xf32, #tpu.memory_space<vmem>>, vector<8x1xf32>
    tpu.vector_store %arg6[%c0_19, %c0_20], %30 {strides = array<i32>} : memref<8x1xf32, #tpu.memory_space<vmem>>, vector<8x1xf32>,
    return
  }
  func.func @transform_0(%arg0: i32) -> (i32, i32) {
    %c0_i32 = arith.constant 0 : i32
    %c0_i32_0 = arith.constant 0 : i32
    return %arg0, %c0_i32 : i32, i32
  }
  func.func @transform_1(%arg0: i32) -> (i32, i32) {
    %c0_i32 = arith.constant 0 : i32
    %c0_i32_0 = arith.constant 0 : i32
    %c0_i32_1 = arith.constant 0 : i32
    return %c0_i32, %c0_i32_0 : i32, i32
  }
  func.func @transform_2(%arg0: i32) -> (i32, i32) {
    %c0_i32 = arith.constant 0 : i32
    %c0_i32_0 = arith.constant 0 : i32
    %c0_i32_1 = arith.constant 0 : i32
    return %c0_i32, %c0_i32_0 : i32, i32
  }
  func.func @transform_3(%arg0: i32) -> (i32, i32) {
    %c0_i32 = arith.constant 0 : i32
    %c0_i32_0 = arith.constant 0 : i32
    %c0_i32_1 = arith.constant 0 : i32
    return %c0_i32, %c0_i32_0 : i32, i32
  }
  func.func @transform_4(%arg0: i32) -> i32 {
    %c0_i32 = arith.constant 0 : i32
    %c0_i32_0 = arith.constant 0 : i32
    return %c0_i32 : i32
  }
  func.func @transform_5(%arg0: i32) -> (i32, i32) {
    %c0_i32 = arith.constant 0 : i32
    %c0_i32_0 = arith.constant 0 : i32
    return %arg0, %c0_i32 : i32, i32
  }
}

</mosaic_0001>

<bundles_post_ra>
// kernel: tpu_custom_call.1
= control target key start
LH: loop header
LB: loop body
LE: loop exit
PB: predicated region body
PF: predicated region fallthrough
CT: control target
= control target key end

     0   :  { %s876_s0 = inlined_call_operand.hbm [shape: bf16[16,16], index: 0, kind: input, shape index: {}]   ;;  %s877_s1 = inlined_call_operand.hbm [shape: bf16[16,512], index: 1, kind: input, shape index: {}]   ;;  %s878_s2 = inlined_call_operand.vmem [shape: f32[1,512], index: 2, kind: input, shape index: {}]   ;;  %s879_s3 = inlined_call_operand.vmem [shape: f32[1,512], index: 3, kind: input, shape index: {}]   ;;  %s880_s4 = inlined_call_operand.<no memory space> [shape: f32[1], index: 4, kind: input, shape index: {}]   ;;  %s881_s5 = inlined_call_operand.vmem [shape: f32[16,1], index: 5, kind: output, shape index: {}]  }
   0x1   :  { %10 = sst [smem:[#allocation2]] %s880_s4 }
   0x2   :  { %11 = vsyncpa [#allocation4], 0 }
   0x3   :  { %13 = vsyncpa [#allocation4 + $0x1], 0 }
   0x4   :  { %14 = vsyncpa [#allocation6], 0  ;;  %s725_s20 = smov 0   ;;  %s727_s21 = smov 0  }
   0x5   :  { %s729_s22 = smov 0   ;;  %s731_s23 = smov 0  }
   0x6 LB: > { %s744_s4 = sadd.s32 4294967295, %s685_s23   ;;  %p40_p0 = scmp.ne.s32.totalorder %s677_s21, %s673_s20  ;;  %s685_s23 = sphi %s731_s23, %s896_s23   ;;  %s681_s22 = sphi %s729_s22, %s895_s22   ;;  %s677_s21 = sphi %s727_s21, %s894_s21   ;;  %s673_s20 = sphi %s725_s20, %s893_s20  }
   0x7   : > { %p882_p1 = scmp.eq.s32.totalorder %s744_s4, 0  ;;  %p513_p2 = scmp.ge.s32.totalorder %s685_s23, 1 }
   0x8   : > { %p161_p3 = scmp.lt.s32.totalorder %s685_s23, 3  ;;  %s687_s26 = smov [#allocation5]  }
   0x9   : > { %p752_p4 = por %p882_p1, %p40_p0  ;;  %s173_s27 = sshll.u32 %s687_s26, 4  ;;  %s174_s27 = int_to_ptr.vmem [resolvable:$true] %s173_s27 }
   0xa   : > { %p756_p5 = pnand %p513_p2, %p161_p3  ;;  %s769_s29 = sadd.s32 1, %s685_s23  }
   0xb   : > { %s885_s24 = scalar_select %p752_p4, 1, 0 }
   0xc   : > { %s886_s25 = scalar_select %p756_p5, 1, 0 }
   0xd   : > { %p536_p6 = pneg %p756_p5  ;;  %s27_s30 = sadd.s32 1, %s681_s22 }
   0xe   : > { %s24_s6 = ssub.s32 %s685_s23, %s769_s29  ;;  %s589_s9 = scalar_lea.hbm %s877_s1, 512 }
   0xf   : > { %p764_p7 = pnand %p536_p6, %p882_p1  ;;  %p590_p8 = scmp.ne.s32.totalorder %s877_s1, %s589_s9 }
  0x10   : > { %p596_p12 = scmp.lt.u32.totalorder %s589_s9, %s877_s1 }
  0x11   : > { %p591_p9 = pneg %p764_p7 }
  0x13   : > { %p592_p10 = pnand %p591_p9, %p590_p8 }
  0x15   : > { %p593_p11 = pneg %p592_p10 }
  0x17   : > { %p598_p13 = pnand %p596_p12, %p593_p11 }
  0x19   : > { %601 = shalt.err (!%p598_p13)
}
  0x1a   : > { %s602_s14 = scalar_lea.vmem %s174_s27, 512  ;;  %p610_p6 = scmp.lt.s32.totalorder %s174_s27, %s174_s27 }
  0x1b   : > { %p603_p0 = scmp.ne.s32.totalorder %s174_s27, %s602_s14  ;;  %p611_p1 = scmp.lt.s32.totalorder %s602_s14, %s602_s14 }
  0x1d   : > { %p605_p2 = pnand %p603_p0, %p591_p9  ;;  %p612_p4 = por %p611_p1, %p610_p6 }
  0x1f   : > { %p606_p3 = pneg %p605_p2 }
  0x21   : > { %p613_p5 = pnand %p612_p4, %p606_p3 }
  0x23   : > { %616 = shalt.err (!%p613_p5)
}
  0x24   : > { %s688_s15 = smov 256   ;;  %s689_s16 = smov 16  }
  0x25   : > { %539 = dma.hbm_to_vmem [thread:$0]  (!%p764_p7), %s877_s1, 512, %s174_s27, [#allocation6], %s688_s15, %s688_s15, %s689_s16  }
  0x26   : > { %p25_p8 = scmp.eq.s32.totalorder %s24_s6, 0  ;;  %p34_p9 = scmp.ne.s32.totalorder %s681_s22, %s677_s21 }
  0x27   : > { %p35_p1 = scmp.eq.s32.totalorder %s685_s23, 0  ;;  %p545_p4 = scmp.lt.s32.totalorder %s685_s23, 2 }
  0x28   : > { %s795_s19 = scalar_select %p25_p8, %s681_s22, %s27_s30  }
  0x29   : > { %p36_p5 = por %p35_p1, %p34_p9  ;;  %s196_s20 = sand.u32 1, %s681_s22  }
  0x2a   : > { %s516_s26 = sshll.u32 %s196_s20, 2  ;;  %s517_s7 = sshll.u32 %s685_s23, 6 }
  0x2b   : > { %s802_s10 = scalar_lea.hbm %s876_s0, %s517_s7  ;;  %s200_s27 = scalar_lea.vmem [#allocation3], %s516_s26 }
  0x2c   : > { %s207_s28 = sshll.u32 %s200_s27, 4  ;;  %p806_p7 = pnand %p545_p4, %p36_p5  ;;  %s804_s28 = int_to_ptr.vmem [resolvable:$true] %s207_s28 }
  0x2d   : > { %s197_s23 = scalar_lea.sflag [#allocation4], %s196_s20  ;;  %s617_s6 = scalar_lea.hbm %s802_s10, 64 }
  0x2e   : > { %p618_p10 = scmp.ne.s32.totalorder %s802_s10, %s617_s6  ;;  %p619_p11 = pneg %p806_p7 }
  0x2f   : > { %s622_s13 = scalar_lea.hbm %s876_s0, 128  ;;  %p623_p0 = scmp.lt.u32.totalorder %s802_s10, %s876_s0 }
  0x30   : > { %p620_p12 = pnand %p619_p11, %p618_p10  ;;  %p624_p2 = scmp.lt.u32.totalorder %s622_s13, %s617_s6 }
  0x31   : > { %p626_p6 = scmp.lt.u32.totalorder %s617_s6, %s802_s10 }
  0x32   : > { %p621_p13 = pneg %p620_p12  ;;  %p625_p3 = por %p624_p2, %p623_p0 }
  0x34   : > { %p627_p8 = por %p626_p6, %p625_p3 }
  0x36   : > { %p628_p9 = pnand %p627_p8, %p621_p13 }
  0x38   : > { %631 = shalt.err (!%p628_p9)
}
  0x39   : > { %s632_s16 = scalar_lea.vmem %s804_s28, 64  ;;  %s690_s17 = smov [#allocation3]  }
  0x3a   : > { %p633_p1 = scmp.ne.s32.totalorder %s804_s28, %s632_s16  ;;  %s637_s18 = sshll.u32 %s690_s17, 4  ;;  %s638_s18 = int_to_ptr.vmem [resolvable:$false] %s637_s18 }
  0x3b   : > { %s639_s20 = scalar_lea.vmem %s638_s18, 128  ;;  %p640_p10 = scmp.lt.s32.totalorder %s804_s28, %s638_s18 }
  0x3c   : > { %p635_p4 = pnand %p633_p1, %p619_p11  ;;  %p641_p12 = scmp.lt.s32.totalorder %s639_s20, %s632_s16 }
  0x3e   : > { %p636_p5 = pneg %p635_p4  ;;  %p642_p0 = por %p641_p12, %p640_p10 }
  0x40   : > { %p643_p2 = pnand %p642_p0, %p636_p5 }
  0x42   : > { %646 = shalt.err (!%p643_p2)
}
  0x43   : > { %543 = dma.hbm_to_vmem [thread:$0]  (!%p806_p7), %s802_s10, 64, %s804_s28, %s197_s23  }
  0x44   : > { %p889_p13 = scmp.ne.s32.totalorder %s886_s25, 0 }
  0x45   : > { %s218_s26 = sand.u32 (!%p889_p13), 1, %s677_s21   ;;  %p890_p11 = scmp.ne.s32.totalorder (!%p889_p13), %s885_s24, 0 }
  0x46   : > { %216 = sbr.rel (%p889_p13) target bundleno = 459 (0x1cb), region = 40  ;;  %s519_s7 = sshll.u32 (!%p889_p13), %s218_s26, 2 }
  0x47   : > { %s219_s8 = scalar_lea.sflag (!%p889_p13), [#allocation4], %s218_s26  ;;  %s222_s9 = scalar_lea.vmem (!%p889_p13), [#allocation3], %s519_s7 }
  0x4d   : > { %664 = dma.done.wait (%p890_p11), %s219_s8, 64  }
  0x4e   : > { %666 = vsyncadd (%p890_p11), %s219_s8, 4294967232  ;;  %p891_p3 = scmp.eq.s32.totalorder %s744_s4, 0 }
  0x50   : > { %668 = dma.done.wait (%p891_p3), [#allocation6], 512   ;;  %p892_p6 = pmov %p891_p3 }
  0x51   : > { %v691_v0 = vmov 0   ;;  %v583_v1 = vld [vmem:[#allocation5 + $0x4] ss:$16 sps:$4 sm:$0xff]   ;;  %v585_v2 = vld [vmem:[#allocation5] ss:$16 sps:$4 sm:$0xff]   ;;  %vm282_vm0 = vcmask 130048   ;;  %v262_v6 = vlaneseq }
  0x52   : > { %670 = vsyncadd (%p892_p6), [#allocation6], 4294966784  ;;  %318 = vmatprep.mubr.bf16.mxu0 %v691_v0  ;;  %403 = vmatprep.mubr.bf16.mxu1 %v691_v0  ;;  %v586_v3 = vld [vmem:[#allocation5 + $0xc] ss:$16 sps:$4 sm:$0xff]   ;;  %v588_v4 = vld [vmem:[#allocation5 + $0x8] ss:$16 sps:$4 sm:$0xff]  }
  0x53   : > { %286 = vmatprep.subr.bf16.mxu0 %v583_v1  ;;  %v257_v5 = vld [vmem:[%s222_s9] sm:$0xf]  ;;  %371 = vmatprep.subr.bf16.mxu1 %v586_v3  ;;  %v263_v7 = vshrl.u32 %v262_v6, 7  ;;  %p252_p7 = scmp.lt.s32.totalorder %s744_s4, 1  ;;  %s432_s11 = sld [smem:[#allocation2]]  ;;  %vm435_vm1 = vcmask 7168  }
  0x54   : > { %287 = vmatpush1.bf16.msra.mxu0 %v585_v2  ;;  %372 = vmatpush1.bf16.msra.mxu1 %v588_v4  ;;  %v260_v9 = vld [vmem:[%s878_s2] sm:$0x3]  ;;  %v349_v11 = vld [vmem:[%s878_s2 + $0x2] sm:$0x3] }
  0x55   : > { %v264_v8 = vsub.s32 0, %v263_v7  ;;  %v268_v10 = vsub.s32 1, %v263_v7  ;;  %v329_v14 = vld [vmem:[%s879_s3] sm:$0x3]  ;;  %v414_v17 = vld [vmem:[%s879_s3 + $0x2] sm:$0x3] }
  0x56   : > { %s898_s4 = smov (!%p252_p7, %s744_s4), 1 }
  0x57   : > { %524 = vmatmul.mubr.msk.bf16.vlgmr.msra.gmra.mrb[0].mxu0 %vm282_vm0, %v257_v5  ;;  %527 = vmatmul.mubr.msk.bf16.vlgmr.msra.gmra.mrb[0].mxu1 %vm282_vm0, %v257_v5  ;;  %v265_v12 = vrot.slane %v260_v9, %v264_v8  ;;  %v269_v13 = vrot.slane %v260_v9, %v268_v10  ;;  %v354_v15 = vrot.slane %v349_v11, %v264_v8  ;;  %s521_s12 = sshll.u32 %s898_s4, 3 }
  0x58   : > { %v358_v18 = vrot.slane %v349_v11, %v268_v10  ;;  %v334_v21 = vrot.slane %v329_v14, %v264_v8  ;;  %v338_v25 = vrot.slane %v329_v14, %v268_v10  ;;  %v419_v28 = vrot.slane %v414_v17, %v264_v8  ;;  %s255_s15 = scalar_lea.vmem %s881_s5, %s521_s12 }
  0x59   : > { %v423_v33 = vrot.slane %v414_v17, %v268_v10  ;;  %v433_v45 = vstv %s432_s11 }
 0x12a   : > { %v320_v16 = vpop.f32.mrb[0].mxu0  ;;  %v405_v23 = vpop.f32.mrb[0].mxu1 }
 0x12b   : > { %v321_v19 = vadd.f32 %v320_v16, %v265_v12  ;;  %v322_v20 = vpop.f32.mrb[1].mxu0  ;;  %v406_v27 = vadd.f32 %v405_v23, %v354_v15  ;;  %v407_v29 = vpop.f32.mrb[1].mxu1 }
 0x12c   : > { %v323_v22 = vadd.f32 %v322_v20, %v269_v13  ;;  %v324_v24 = vpop.f32.mrb[2].mxu0  ;;  %v408_v32 = vadd.f32 %v407_v29, %v358_v18  ;;  %v409_v34 = vpop.f32.mrb[2].mxu1 }
 0x12d   : > { %v327_v26 = vmax.f32 %v321_v19, 0.0  ;;  %v325_v30 = vpop.f32.mrb[3].mxu0  ;;  %v412_v35 = vmax.f32 %v406_v27, 0.0  ;;  %v410_v36 = vpop.f32.mrb[3].mxu1 }
 0x12e   : > { %v328_v31 = vmax.f32 %v323_v22, 0.0  ;;  %v413_v38 = vmax.f32 %v408_v32, 0.0 }
 0x12f   : > { %v341_v37 = vmul.f32 %v334_v21, %v327_v26  ;;  %v426_v40 = vmul.f32 %v419_v28, %v412_v35 }
 0x130   : > { %v342_v39 = vmul.f32 %v338_v25, %v328_v31  ;;  %v427_v41 = vmul.f32 %v423_v33, %v413_v38 }
 0x132   : > { %v343_v42 = vadd.f32 %v342_v39, %v341_v37  ;;  %v428_v43 = vadd.f32 %v427_v41, %v426_v40 }
 0x134   : > { %344 = vadd.xlane.f32.xlu0 %v343_v42 }
 0x138   : > { %429 = vadd.xlane.f32.xlu0 %v428_v43 }
 0x1c1   : > { %v345_v44 = vpop.xlane.xlu0 %344 }
 0x1c5   : > { %v430_v46 = vpop.xlane.xlu0 %429 }
 0x1c6   : > { %v431_v47 = vadd.f32 %v430_v46, %v345_v44 }
 0x1c8   : > { %v434_v48 = vadd.f32 %v433_v45, %v431_v47 }
 0x1ca   : > { %436 = vst.msk [vmem:[%s255_s15] sm:$0xff] %vm435_vm1, %v434_v48 }
 0x1cb PF: > { %p17_p8 = scmp.ge.s32.totalorder %s769_s29, 4   ;;  %s893_s20 = smov %s677_s21 }
 0x1cc   : > { %s894_s21 = smov %s681_s22  ;;  %s895_s22 = smov %s795_s19 }
 0x1cd   : > { %s896_s23 = smov %s769_s29  ;;  %19 = sbr.rel (!%p17_p8) target bundleno = 6 (0x6), region = 84 }
 0x1d4   :  { %456 = vsyncpa [#allocation4], 1 }
 0x1d5   :  { %458 = vsyncpa [#allocation4 + $0x1], 1 }
 0x1d6   :  { %459 = vsyncpa [#allocation6], 1 }

</bundles_post_ra>
